<compile_context>
chip_gen: v5e
topology: v5e:2x2
jax: 0.10.0
libtpu: 0.0.40
codegen_flags: <defaults>
</compile_context>

<pallas_src>
import jax
import jax.numpy as jnp
from jax.experimental import pallas as pl
from jax.experimental.pallas import tpu as pltpu

model_config = [(32, 3, 1), (64, 3, 2), ['B', 1], (128, 3, 2), ['B', 2],
                (256, 3, 2), ['B', 8], (512, 3, 2), ['B', 8], (1024, 3, 2),
                ['B', 4], (512, 1, 1), (1024, 3, 1), 'S', (256, 1, 1), 'U',
                (256, 1, 1), (512, 3, 1), 'S', (128, 1, 1), 'U', (128, 1, 1),
                (256, 3, 1), 'S']

BN_EPS = 1e-5
LEAKY_SLOPE = 0.1
MAX_TK = 1024          # max contraction chunk (K*K*Cin axis), multiple of 128
TM = 256               # M-tile (rows of N*Ho*Wo), multiple of 8
COMPUTE_DTYPE = jnp.bfloat16


# ----------------------------------------------------------------------------
# helpers
# ----------------------------------------------------------------------------
def _round_up(x, m):
    return (x + m - 1) // m * m


def _pad_lanes(c):
    return _round_up(c, 128)


def _choose_tk(kp):
    if kp <= MAX_TK:
        return kp
    t = (MAX_TK // 128) * 128
    while t >= 128:
        if kp % t == 0:
            return t
        t -= 128
    return 128   # kp is a multiple of 128 whenever kp > MAX_TK (see _pad_k)


def _pad_k(patches, w2d):
    """Pad the contraction dim to a sublane/lane friendly size (zeros)."""
    kdim = patches.shape[1]
    kp = _round_up(kdim, 8)
    if kp > MAX_TK:
        kp = _round_up(kdim, 128)
    if kp != kdim:
        patches = jnp.pad(patches, ((0, 0), (0, kp - kdim)))
        w2d = jnp.pad(w2d, ((0, kp - kdim), (0, 0)))
    return patches, w2d


def _choose_tm(m):
    if m <= TM:
        return m, m
    return TM, _round_up(m, TM)


# ----------------------------------------------------------------------------
# Pallas kernels
# ----------------------------------------------------------------------------
def _matmul_stats_kernel(p_ref, w_ref, y_ref, stat_ref, acc_ref):
    """M-tiled matmul; epilogue writes bf16 conv output plus per-tile column
    sums / sums-of-squares (rows 0/1 of an (8, Cout) f32 slab)."""
    k = pl.program_id(1)

    @pl.when(k == 0)
    def _():
        acc_ref[...] = jnp.zeros_like(acc_ref)

    acc_ref[...] += jnp.dot(p_ref[...], w_ref[...],
                            preferred_element_type=jnp.float32)

    @pl.when(k == pl.num_programs(1) - 1)
    def _():
        y = acc_ref[...]
        y_ref[...] = y.astype(y_ref.dtype)
        srow = jnp.sum(y, axis=0, keepdims=True)
        sqrow = jnp.sum(y * y, axis=0, keepdims=True)
        zeros = jnp.zeros((6, srow.shape[-1]), jnp.float32)
        stat_ref[...] = jnp.concatenate([srow, sqrow, zeros], axis=0)


def _matmul_bias_kernel(p_ref, w_ref, b_ref, y_ref, acc_ref):
    """M-tiled matmul + bias (bn_act=False prediction head), f32 output."""
    k = pl.program_id(1)

    @pl.when(k == 0)
    def _():
        acc_ref[...] = jnp.zeros_like(acc_ref)

    acc_ref[...] += jnp.dot(p_ref[...], w_ref[...],
                            preferred_element_type=jnp.float32)

    @pl.when(k == pl.num_programs(1) - 1)
    def _():
        y_ref[...] = (acc_ref[...] + b_ref[...]).astype(y_ref.dtype)


def _make_fused_bn_kernel(with_residual):
    """Single-M-tile fused matmul + BN(batch stats) + LeakyReLU (+residual)."""
    def kernel(*refs):
        if with_residual:
            p_ref, w_ref, g_ref, b_ref, r_ref, o_ref, acc_ref = refs
        else:
            p_ref, w_ref, g_ref, b_ref, o_ref, acc_ref = refs

        k = pl.program_id(0)

        @pl.when(k == 0)
        def _():
            acc_ref[...] = jnp.zeros_like(acc_ref)

        acc_ref[...] += jnp.dot(p_ref[...], w_ref[...],
                                preferred_element_type=jnp.float32)

        @pl.when(k == pl.num_programs(0) - 1)
        def _():
            y = acc_ref[...]
            mean = jnp.mean(y, axis=0, keepdims=True)
            var = jnp.mean(jnp.square(y - mean), axis=0, keepdims=True)
            yn = (y - mean) * jax.lax.rsqrt(var + BN_EPS)
            yn = yn * g_ref[...] + b_ref[...]
            out = jnp.where(yn >= 0, yn, LEAKY_SLOPE * yn)
            if with_residual:
                out = out + r_ref[...].astype(jnp.float32)
            o_ref[...] = out.astype(o_ref.dtype)

    return kernel


def _bn_apply_kernel(y_ref, s_ref, t_ref, o_ref):
    y = y_ref[...].astype(jnp.float32) * s_ref[...] + t_ref[...]
    o_ref[...] = jnp.where(y >= 0, y, LEAKY_SLOPE * y).astype(o_ref.dtype)


def _bn_apply_res_kernel(y_ref, s_ref, t_ref, r_ref, o_ref):
    y = y_ref[...].astype(jnp.float32) * s_ref[...] + t_ref[...]
    y = jnp.where(y >= 0, y, LEAKY_SLOPE * y) + r_ref[...].astype(jnp.float32)
    o_ref[...] = y.astype(o_ref.dtype)


# ----------------------------------------------------------------------------
# conv wrappers (im2col slab -> Pallas)
# ----------------------------------------------------------------------------
def conv_bn_leaky(patches, w2d, gamma, beta, residual=None):
    """Conv + BatchNorm(batch stats) + LeakyReLU(0.1) (+residual).
    patches: (M, Kdim) bf16, w2d: (Kdim, CoutPad) bf16 -> (M, CoutPad) bf16."""
    m = patches.shape[0]
    coutp = w2d.shape[1]
    patches, w2d = _pad_k(patches, w2d)
    kp = patches.shape[1]
    tk = _choose_tk(kp)
    nk = kp // tk
    tm, mp = _choose_tm(m)
    nm = mp // tm

    g2 = gamma.reshape(1, coutp).astype(jnp.float32)
    b2 = beta.reshape(1, coutp).astype(jnp.float32)

    if nm == 1:
        # Deep layers / small maps: one fused call (no extra launch overhead).
        in_specs = [
            pl.BlockSpec((m, tk), lambda k: (0, k)),
            pl.BlockSpec((tk, coutp), lambda k: (k, 0)),
            pl.BlockSpec((1, coutp), lambda k: (0, 0)),
            pl.BlockSpec((1, coutp), lambda k: (0, 0)),
        ]
        args = [patches, w2d, g2, b2]
        if residual is not None:
            in_specs.append(pl.BlockSpec((m, coutp), lambda k: (0, 0)))
            args.append(residual)
        return pl.pallas_call(
            _make_fused_bn_kernel(residual is not None),
            out_shape=jax.ShapeDtypeStruct((m, coutp), COMPUTE_DTYPE),
            grid_spec=pltpu.PrefetchScalarGridSpec(
                num_scalar_prefetch=0,
                grid=(nk,),
                in_specs=in_specs,
                out_specs=pl.BlockSpec((m, coutp), lambda k: (0, 0)),
                scratch_shapes=[pltpu.VMEM((m, coutp), jnp.float32)],
            ),
            compiler_params=pltpu.CompilerParams(
                dimension_semantics=("arbitrary",)),
        )(*args)

    # Large M: pass 1 = M-tiled matmul + per-tile stats, pass 2 = BN apply.
    if mp != m:
        patches = jnp.pad(patches, ((0, mp - m), (0, 0)))

    y, stats = pl.pallas_call(
        _matmul_stats_kernel,
        out_shape=(jax.ShapeDtypeStruct((mp, coutp), COMPUTE_DTYPE),
                   jax.ShapeDtypeStruct((8 * nm, coutp), jnp.float32)),
        grid_spec=pltpu.PrefetchScalarGridSpec(
            num_scalar_prefetch=0,
            grid=(nm, nk),
            in_specs=[
                pl.BlockSpec((tm, tk), lambda i, k: (i, k)),
                pl.BlockSpec((tk, coutp), lambda i, k: (k, 0)),
            ],
            out_specs=[
                pl.BlockSpec((tm, coutp), lambda i, k: (i, 0)),
                pl.BlockSpec((8, coutp), lambda i, k: (i, 0)),
            ],
            scratch_shapes=[pltpu.VMEM((tm, coutp), jnp.float32)],
        ),
        compiler_params=pltpu.CompilerParams(
            dimension_semantics=("parallel", "arbitrary")),
    )(patches, w2d)

    # Combine per-tile partial sums (tiny XLA reduction); zero-padded rows
    # contribute nothing, and we divide by the true M => exact batch stats.
    stats = stats.reshape(nm, 8, coutp)
    colsum = jnp.sum(stats[:, 0, :], axis=0)
    colsq = jnp.sum(stats[:, 1, :], axis=0)
    mean = colsum / m
    var = jnp.maximum(colsq / m - mean * mean, 0.0)
    scale = gamma.astype(jnp.float32) * jax.lax.rsqrt(var + BN_EPS)
    shift = beta.astype(jnp.float32) - mean * scale
    scale2 = scale.reshape(1, coutp)
    shift2 = shift.reshape(1, coutp)

    in_specs = [
        pl.BlockSpec((tm, coutp), lambda i: (i, 0)),
        pl.BlockSpec((1, coutp), lambda i: (0, 0)),
        pl.BlockSpec((1, coutp), lambda i: (0, 0)),
    ]
    args = [y, scale2, shift2]
    kernel = _bn_apply_kernel
    if residual is not None:
        res = residual
        if mp != m:
            res = jnp.pad(res, ((0, mp - m), (0, 0)))
        in_specs.append(pl.BlockSpec((tm, coutp), lambda i: (i, 0)))
        args.append(res)
        kernel = _bn_apply_res_kernel

    out = pl.pallas_call(
        kernel,
        out_shape=jax.ShapeDtypeStruct((mp, coutp), COMPUTE_DTYPE),
        grid_spec=pltpu.PrefetchScalarGridSpec(
            num_scalar_prefetch=0,
            grid=(nm,),
            in_specs=in_specs,
            out_specs=pl.BlockSpec((tm, coutp), lambda i: (i, 0)),
        ),
        compiler_params=pltpu.CompilerParams(
            dimension_semantics=("parallel",)),
    )(*args)
    return out[:m] if mp != m else out


def conv_bias(patches, w2d, bias):
    """Conv + bias (bn_act=False head). Returns (M, CoutPad) float32."""
    m = patches.shape[0]
    coutp = w2d.shape[1]
    patches, w2d = _pad_k(patches, w2d)
    kp = patches.shape[1]
    tk = _choose_tk(kp)
    nk = kp // tk
    tm, mp = _choose_tm(m)
    nm = mp // tm
    if mp != m:
        patches = jnp.pad(patches, ((0, mp - m), (0, 0)))
    b2 = bias.reshape(1, coutp).astype(jnp.float32)

    out = pl.pallas_call(
        _matmul_bias_kernel,
        out_shape=jax.ShapeDtypeStruct((mp, coutp), jnp.float32),
        grid_spec=pltpu.PrefetchScalarGridSpec(
            num_scalar_prefetch=0,
            grid=(nm, nk),
            in_specs=[
                pl.BlockSpec((tm, tk), lambda i, k: (i, k)),
                pl.BlockSpec((tk, coutp), lambda i, k: (k, 0)),
                pl.BlockSpec((1, coutp), lambda i, k: (0, 0)),
            ],
            out_specs=pl.BlockSpec((tm, coutp), lambda i, k: (i, 0)),
            scratch_shapes=[pltpu.VMEM((tm, coutp), jnp.float32)],
        ),
        compiler_params=pltpu.CompilerParams(
            dimension_semantics=("parallel", "arbitrary")),
    )(patches, w2d, b2)
    return out[:m] if mp != m else out


# ----------------------------------------------------------------------------
# JAX glue: im2col, upsample, layer plumbing.
# ----------------------------------------------------------------------------
def im2col(x, k, stride, pad):
    """x: (N, H, W, C) -> (N*Ho*Wo, K*K*C) with (kh, kw, cin) ordering."""
    if pad:
        x = jnp.pad(x, ((0, 0), (pad, pad), (pad, pad), (0, 0)))
    n, hp, wp, c = x.shape
    ho = (hp - k) // stride + 1
    wo = (wp - k) // stride + 1
    cols = []
    for kh in range(k):
        for kw in range(k):
            cols.append(x[:, kh:kh + ho * stride:stride,
                          kw:kw + wo * stride:stride, :])
    patches = jnp.concatenate(cols, axis=-1)
    return patches.reshape(n * ho * wo, k * k * c), (n, ho, wo)


def cnn_block_apply(x, p, residual=None):
    """CNNBlock: conv (+BN(batch stats)+LeakyReLU if bn_act) via Pallas."""
    k, stride, pad = p["ksize"], p["stride"], p["pad"]
    patches, (n, ho, wo) = im2col(x, k, stride, pad)
    coutp = p["cout_pad"]
    w2d = p["w"].reshape(-1, coutp)
    if p["bn_act"]:
        res2d = None
        if residual is not None:
            res2d = residual.reshape(-1, coutp)
        y = conv_bn_leaky(patches, w2d, p["gamma"], p["beta"], res2d)
    else:
        y = conv_bias(patches, w2d, p["bias"])
    return y.reshape(n, ho, wo, coutp)


def residual_forward(layer, x):
    for (c1, c2) in layer["blocks"]:
        h = cnn_block_apply(x, c1)
        if layer["use_residual"]:
            x = cnn_block_apply(h, c2, residual=x)   # residual add fused
        else:
            x = cnn_block_apply(h, c2)
    return x


def upsample2(x):
    # nn.Upsample(scale_factor=2), mode='nearest'
    x = jnp.repeat(x, 2, axis=1)
    x = jnp.repeat(x, 2, axis=2)
    return x


def scale_pred_forward(layer, x):
    h = cnn_block_apply(x, layer["cnn1"])
    y = cnn_block_apply(h, layer["cnn2"])            # (N, H, W, 256) f32
    nc = layer["num_classes"]
    y = y[..., :3 * (nc + 5)]                        # drop lane padding
    n, hh, ww, _ = y.shape
    y = y.reshape(n, hh, ww, 3, nc + 5)
    # Matches torch: reshape(N,3,nc+5,H,W).permute(0,1,3,4,2)
    return jnp.transpose(y, (0, 3, 1, 2, 4))         # (N, 3, H, W, nc+5)


def yolov3_forward(layers, x_nchw):
    x = jnp.transpose(x_nchw, (0, 2, 3, 1)).astype(COMPUTE_DTYPE)  # NCHW->NHWC
    outputs = []
    routes = []
    for layer in layers:
        t = layer["type"]
        if t == "scale_pred":
            outputs.append(scale_pred_forward(layer, x))
            continue
        if t == "cnn":
            x = cnn_block_apply(x, layer)
        elif t == "residual":
            x = residual_forward(layer, x)
            if layer["num_repeats"] == 8:
                routes.append(x)
        elif t == "upsample":
            x = upsample2(x)
            x = jnp.concatenate([x, routes[-1]], axis=-1)
            routes.pop()
    return outputs


# ----------------------------------------------------------------------------
# Deterministic synthetic parameter construction (mirrors _create_conv_layers)
# Channel dims are zero-padded to multiples of 128 (lane-dense layout).
# ----------------------------------------------------------------------------
def _init_cnn(key, cin_pad, cin_true, cout, k, stride, pad, bn_act):
    cout_pad = _pad_lanes(cout)
    kw, kb = jax.random.split(key)
    fan_in = float(cin_true * k * k)
    w_true = jax.random.normal(kw, (k, k, cin_true, cout),
                               jnp.float32) / (fan_in ** 0.5)
    w = jnp.zeros((k, k, cin_pad, cout_pad), jnp.float32)
    w = w.at[:, :, :cin_true, :cout].set(w_true)
    p = dict(w=w.astype(COMPUTE_DTYPE), ksize=k, stride=stride, pad=pad,
             bn_act=bn_act, cout=cout, cout_pad=cout_pad)
    if bn_act:
        p["gamma"] = jnp.ones((cout_pad,), jnp.float32)   # BatchNorm2d defaults
        p["beta"] = jnp.zeros((cout_pad,), jnp.float32)
    else:
        b = jnp.zeros((cout_pad,), jnp.float32)
        b = b.at[:cout].set(0.01 * jax.random.normal(kb, (cout,), jnp.float32))
        p["bias"] = b
    return p


def build_yolov3_params(key, in_channels=3, num_classes=80):
    layers = []
    counter = [0]

    def nk():
        counter[0] += 1
        return jax.random.fold_in(key, counter[0])

    c, cp = in_channels, in_channels      # true / lane-padded channel counts
    for module in model_config:
        if isinstance(module, tuple):
            cout, k, s = module
            layers.append(dict(type="cnn",
                               **_init_cnn(nk(), cp, c, cout, k, s,
                                           1 if k == 3 else 0, True)))
            c, cp = cout, _pad_lanes(cout)
        elif isinstance(module, list):
            nrep = module[1]
            blocks = []
            for _ in range(nrep):
                mid, midp = c // 2, _pad_lanes(c // 2)
                c1 = _init_cnn(nk(), cp, c, mid, 1, 1, 0, True)
                c2 = _init_cnn(nk(), midp, mid, c, 3, 1, 1, True)
                blocks.append((c1, c2))
            layers.append(dict(type="residual", use_residual=True,
                               num_repeats=nrep, blocks=blocks))
        elif module == 'S':
            mid, midp = c // 2, _pad_lanes(c // 2)
            r1 = _init_cnn(nk(), cp, c, mid, 1, 1, 0, True)
            r2 = _init_cnn(nk(), midp, mid, c, 3, 1, 1, True)
            layers.append(dict(type="residual", use_residual=False,
                               num_repeats=1, blocks=[(r1, r2)]))
            layers.append(dict(type="cnn",
                               **_init_cnn(nk(), cp, c, mid, 1, 1, 0, True)))
            sp1 = _init_cnn(nk(), midp, mid, c, 3, 1, 1, True)
            sp2 = _init_cnn(nk(), _pad_lanes(c), c, 3 * (num_classes + 5),
                            1, 1, 0, False)
            layers.append(dict(type="scale_pred", cnn1=sp1, cnn2=sp2,
                               num_classes=num_classes))
            c, cp = mid, midp
        elif module == 'U':
            layers.append(dict(type="upsample"))
            c, cp = c * 3, cp * 3
    return layers


if __name__ == "__main__":
    key = jax.random.PRNGKey(0)
    num_classes = 80
    N, Cin, H, W = 2, 3, 32, 32   # 32x32 -> feature maps of 4x4, 2x2, 1x1

    x = jax.random.normal(jax.random.fold_in(key, 999),
                          (N, Cin, H, W), jnp.float32)

    params = build_yolov3_params(key, in_channels=Cin, num_classes=num_classes)
    outs = yolov3_forward(params, x)
    outs = jax.block_until_ready(outs)

    expected = [(N, 3, 1, 1, num_classes + 5),
                (N, 3, 2, 2, num_classes + 5),
                (N, 3, 4, 4, num_classes + 5)]
    got = [tuple(o.shape) for o in outs]
    assert got == expected, (got, expected)
    assert all(bool(jnp.all(jnp.isfinite(o.astype(jnp.float32)))) for o in outs)
    print("KERNEL_OK")
</pallas_src>

<mosaic_0001>
module attributes {stable_mosaic.version = 11 : i64} {
  func.func @_matmul_stats_kernel(%arg0: i32, %arg1: i32, %arg2: memref<256x32xbf16, #tpu.memory_space<vmem>>, %arg3: memref<32x128xbf16, #tpu.memory_space<vmem>>, %arg4: memref<256x128xbf16, #tpu.memory_space<vmem>>, %arg5: memref<8x128xf32, #tpu.memory_space<vmem>>, %arg6: memref<256x128xf32, #tpu.memory_space<vmem>>) attributes {dimension_semantics = [#tpu.dimension_semantics<parallel>, #tpu.dimension_semantics<arbitrary>], iteration_bounds = array<i64: 8, 1>, scalar_prefetch = 0 : i64, scratch_operands = 1 : i64, tpu.core_type = #tpu.core_type<tc>, window_params = [{transform_indices = @transform_0, window_bounds = array<i64: 256, 32>}, {transform_indices = @transform_1, window_bounds = array<i64: 32, 128>}, {transform_indices = @transform_2, window_bounds = array<i64: 256, 128>}, {transform_indices = @transform_3, window_bounds = array<i64: 8, 128>}]} {
    %c0_i32 = arith.constant 0 : i32
    %0 = arith.cmpi eq, %arg1, %c0_i32 : i32
    %1 = arith.extui %0 : i1 to i32
    %c0_i32_0 = arith.constant 0 : i32
    %2 = arith.cmpi ne, %1, %c0_i32_0 : i32
    scf.if %2 {
      %cst_10 = arith.constant 0.000000e+00 : f32
      %12 = vector.broadcast %cst_10 : f32 to vector<256x128xf32>
      %c0_11 = arith.constant 0 : index
      %c0_12 = arith.constant 0 : index
      %13 = vector.load %arg6[%c0_11, %c0_12] : memref<256x128xf32, #tpu.memory_space<vmem>>, vector<256x128xf32>
      tpu.vector_store %arg6[%c0_11, %c0_12], %12 {strides = array<i32>} : memref<256x128xf32, #tpu.memory_space<vmem>>, vector<256x128xf32>,
    } else {
    }
    %c0 = arith.constant 0 : index
    %c0_1 = arith.constant 0 : index
    %3 = vector.load %arg6[%c0, %c0_1] : memref<256x128xf32, #tpu.memory_space<vmem>>, vector<256x128xf32>
    %c0_2 = arith.constant 0 : index
    %c0_3 = arith.constant 0 : index
    %4 = vector.load %arg2[%c0_2, %c0_3] : memref<256x32xbf16, #tpu.memory_space<vmem>>, vector<256x32xbf16>
    %c0_4 = arith.constant 0 : index
    %c0_5 = arith.constant 0 : index
    %5 = vector.load %arg3[%c0_4, %c0_5] : memref<32x128xbf16, #tpu.memory_space<vmem>>, vector<32x128xbf16>
    %cst = arith.constant dense<0.000000e+00> : vector<256x128xf32>
    %6 = tpu.matmul %4, %5, %cst {dimension_numbers = #tpu.dot_dimension_numbers<[1], [0], [0], [1], [0, 0, 1, 1], [], []>} : vector<256x32xbf16>, vector<32x128xbf16>, vector<256x128xf32> -> vector<256x128xf32>
    %7 = arith.addf %3, %6 : vector<256x128xf32>
    %c0_6 = arith.constant 0 : index
    %c0_7 = arith.constant 0 : index
    %8 = vector.load %arg6[%c0_6, %c0_7] : memref<256x128xf32, #tpu.memory_space<vmem>>, vector<256x128xf32>
    tpu.vector_store %arg6[%c0_6, %c0_7], %7 {strides = array<i32>} : memref<256x128xf32, #tpu.memory_space<vmem>>, vector<256x128xf32>,
    %c0_i32_8 = arith.constant 0 : i32
    %9 = arith.cmpi eq, %arg1, %c0_i32_8 : i32
    %10 = arith.extui %9 : i1 to i32
    %c0_i32_9 = arith.constant 0 : i32
    %11 = arith.cmpi ne, %10, %c0_i32_9 : i32
    scf.if %11 {
      %c0_10 = arith.constant 0 : index
      %c0_11 = arith.constant 0 : index
      %12 = vector.load %arg6[%c0_10, %c0_11] : memref<256x128xf32, #tpu.memory_space<vmem>>, vector<256x128xf32>
      %13 = arith.truncf %12 : vector<256x128xf32> to vector<256x128xbf16>
      %c0_12 = arith.constant 0 : index
      %c0_13 = arith.constant 0 : index
      %14 = vector.load %arg4[%c0_12, %c0_13] : memref<256x128xbf16, #tpu.memory_space<vmem>>, vector<256x128xbf16>
      tpu.vector_store %arg4[%c0_12, %c0_13], %13 {strides = array<i32>} : memref<256x128xbf16, #tpu.memory_space<vmem>>, vector<256x128xbf16>,
      %cst_14 = arith.constant dense<0.000000e+00> : vector<128xf32>
      %15 = vector.multi_reduction <add>, %12, %cst_14 [0] : vector<256x128xf32> to vector<128xf32>
      %16 = vector.shape_cast %15 : vector<128xf32> to vector<1x128xf32>
      %17 = arith.mulf %12, %12 : vector<256x128xf32>
      %cst_15 = arith.constant dense<0.000000e+00> : vector<128xf32>
      %18 = vector.multi_reduction <add>, %17, %cst_15 [0] : vector<256x128xf32> to vector<128xf32>
      %19 = vector.shape_cast %18 : vector<128xf32> to vector<1x128xf32>
      %cst_16 = arith.constant 0.000000e+00 : f32
      %20 = vector.broadcast %cst_16 : f32 to vector<6x128xf32>
      %21 = tpu.concatenate %16, %19, %20 in 0 : vector<1x128xf32>, vector<1x128xf32>, vector<6x128xf32> -> vector<8x128xf32>
      %c0_17 = arith.constant 0 : index
      %c0_18 = arith.constant 0 : index
      %22 = vector.load %arg5[%c0_17, %c0_18] : memref<8x128xf32, #tpu.memory_space<vmem>>, vector<8x128xf32>
      tpu.vector_store %arg5[%c0_17, %c0_18], %21 {strides = array<i32>} : memref<8x128xf32, #tpu.memory_space<vmem>>, vector<8x128xf32>,
    } else {
    }
    return
  }
  func.func @transform_0(%arg0: i32, %arg1: i32) -> (i32, i32) {
    %c0_i32 = arith.constant 0 : i32
    return %arg0, %arg1 : i32, i32
  }
  func.func @transform_1(%arg0: i32, %arg1: i32) -> (i32, i32) {
    %c0_i32 = arith.constant 0 : i32
    %c0_i32_0 = arith.constant 0 : i32
    return %arg1, %c0_i32 : i32, i32
  }
  func.func @transform_2(%arg0: i32, %arg1: i32) -> (i32, i32) {
    %c0_i32 = arith.constant 0 : i32
    %c0_i32_0 = arith.constant 0 : i32
    return %arg0, %c0_i32 : i32, i32
  }
  func.func @transform_3(%arg0: i32, %arg1: i32) -> (i32, i32) {
    %c0_i32 = arith.constant 0 : i32
    %c0_i32_0 = arith.constant 0 : i32
    return %arg0, %c0_i32 : i32, i32
  }
}

</mosaic_0001>

<bundles_post_ra>
// kernel: tpu_custom_call.1
= control target key start
LH: loop header
LB: loop body
LE: loop exit
PB: predicated region body
PF: predicated region fallthrough
CT: control target
= control target key end

     0   :  { %9 = vsyncpa [#allocation4], 0  ;;  %s1724_s0 = inlined_call_operand.vmem [shape: bf16[2048,32], index: 0, kind: input, shape index: {}]   ;;  %s1725_s1 = inlined_call_operand.vmem [shape: bf16[32,128], index: 1, kind: input, shape index: {}]   ;;  %s1726_s2 = inlined_call_operand.hbm [shape: bf16[2048,128], index: 2, kind: output, shape index: {0}]   ;;  %s1727_s3 = inlined_call_operand.hbm [shape: f32[64,128], index: 3, kind: output, shape index: {1}]  }
   0x1   :  { %11 = vsyncpa [#allocation4 + $0x1], 0 }
   0x2   :  { %12 = vsyncpa [#allocation6], 0 }
   0x3   :  { %14 = vsyncpa [#allocation6 + $0x1], 0  ;;  %s1414_s12 = smov 0   ;;  %s1416_s13 = smov 0  }
   0x4   :  { %s1418_s14 = smov 0   ;;  %s1420_s15 = smov 0  }
   0x5   :  { %s1422_s16 = smov 0   ;;  %s1424_s17 = smov 0  }
   0x6 LB: > { %s993_s18 = sadd.s32 4294967295, %s1390_s17   ;;  %s994_s19 = sadd.s32 4294967294, %s1390_s17   ;;  %s1390_s17 = sphi %s1424_s17, %s20_s17   ;;  %s1386_s16 = sphi %s1422_s16, %s1734_s16   ;;  %s1382_s15 = sphi %s1420_s15, %s1733_s15   ;;  %s1378_s14 = sphi %s1418_s14, %s1732_s14   ;;  %s1374_s13 = sphi %s1416_s13, %s1731_s13   ;;  %s1370_s12 = sphi %s1414_s12, %s1730_s12  }
   0x7   : > { %s32_s20 = sadd.s32 1, %s1386_s16  ;;  %s93_s21 = sadd.s32 1, %s1378_s14 }
   0x8   : > { %p34_p0 = scmp.ge.s32.totalorder %s32_s20, 8  ;;  %p103_p1 = scmp.ne.s32.totalorder %s1378_s14, %s1374_s13 }
   0x9   : > { %p104_p2 = scmp.eq.s32.totalorder %s993_s18, 7  ;;  %p109_p3 = scmp.ne.s32.totalorder %s1374_s13, %s1370_s12 }
   0xa   : > { %s1736_s20 = smov (%p34_p0, %s32_s20), 0  ;;  %p110_p5 = scmp.eq.s32.totalorder %s994_s19, 7 }
   0xb   : > { %p1454_p4 = por %p104_p2, %p103_p1  ;;  %s90_s23 = ssub.s32 %s1386_s16, %s1736_s20 }
   0xc   : > { %p998_p6 = scmp.ge.s32.totalorder %s1390_s17, 1  ;;  %p91_p7 = scmp.eq.s32.totalorder %s90_s23, 0 }
   0xd   : > { %p1461_p8 = por %p110_p5, %p109_p3  ;;  %p175_p9 = scmp.lt.s32.totalorder %s1390_s17, 9 }
   0xe   : > { %s1467_s25 = scalar_select %p91_p7, %s1378_s14, %s93_s21  }
   0xf   : > { %p176_p10 = pnand %p998_p6, %p175_p9 }
  0x10   : > { %s1001_s28 = sshll.u32 (!%p176_p10), %s1382_s15, 5  ;;  %s1516_s8 = sand.u32 (!%p176_p10), 1, %s1374_s13  }
  0x11   : > { %179 = sbr.rel (%p176_p10) target bundleno = 281 (0x119), region = 28  ;;  %p213_p11 = scmp.lt.s32.totalorder (!%p176_p10), %s1001_s28, 255 }
  0x12   : > { %s999_s9 = sshll.u32 (!%p176_p10), %s1516_s8, 7  ;;  %s1116_s11 = sshll.u32 (!%p176_p10), %s1382_s15, 7 }
  0x13   : > { %s1527_s10 = scalar_lea.vmem (!%p176_p10), [#allocation3], %s999_s9  ;;  %s854_s21 = scalar_lea.hbm (!%p176_p10), %s1726_s2, %s1116_s11 }
  0x14   : > { %s855_s23 = sshll.u32 (!%p176_p10), %s1527_s10, 4  ;;  %s857_s26 = sshll.u32 (!%p176_p10), %s854_s21, 4  ;;  %s1614_s23 = int_to_ptr.vmem [resolvable:$true] %s855_s23  ;;  %s858_s26 = int_to_ptr.hbm [resolvable:$true] %s857_s26 }
  0x15   : > { %s838_s27 = scalar_lea.sflag (!%p176_p10), [#allocation4], %s1516_s8  ;;  %s1300_s5 = scalar_lea.hbm (!%p176_p10), %s1726_s2, 1024 }
  0x16   : > { %v1115_v0 = vld [vmem:[%s1725_s1 + $0x8] sm:$0xff]  ;;  %v1114_v1 = vld [vmem:[%s1725_s1] sm:$0xff]  ;;  %s1738_s28 = smov (!%p213_p11, %s1001_s28), 255  ;;  %vm425_vm0 = vcmask 261120  }
  0x17   : > { %480 = vmatpush.bf16.msra.mxu0 %v1115_v0  ;;  %1212 = vmatpush.bf16.msra.mxu1 %v1115_v0  ;;  %s1002_s4 = sshll.u32 %s1738_s28, 2  ;;  %s1294_s28 = sshra.s32 %s858_s26, 4  ;;  %s1295_s28 = int_to_ptr.hbm [resolvable:$true] %s1294_s28 }
  0x18   : > { %1213 = vmatpush.bf16.msra.mxu2 %v1115_v0  ;;  %1214 = vmatpush.bf16.msra.mxu3 %v1115_v0  ;;  %s1479_s7 = scalar_lea.vmem %s1724_s0, %s1002_s4  ;;  %s1296_s29 = scalar_lea.hbm %s1295_s28, 128 }
  0x19   : > { %v1098_v2 = vld [vmem:[%s1479_s7] sm:$0xff]  ;;  %v1099_v6 = vld [vmem:[%s1479_s7 + $0x8] sm:$0xff]  ;;  %v1100_v10 = vld [vmem:[%s1479_s7 + $0x10] sm:$0xff]  ;;  %p1297_p12 = scmp.ne.s32.totalorder %s1295_s28, %s1296_s29  ;;  %p1301_p1 = scmp.lt.s32.totalorder %s1295_s28, %s1726_s2 }
  0x1a   : > { %v1102_v3 = vld [vmem:[%s1479_s7 + $0x20] sm:$0xff]  ;;  %v1103_v7 = vld [vmem:[%s1479_s7 + $0x28] sm:$0xff]  ;;  %v1104_v11 = vld [vmem:[%s1479_s7 + $0x30] sm:$0xff]  ;;  %p1302_p2 = scmp.lt.s32.totalorder %s1300_s5, %s1296_s29 }
  0x1b   : > { %481 = vmatpush.bf16.msra.mxu0 %v1114_v1  ;;  %1215 = vmatpush.bf16.msra.mxu1 %v1114_v1  ;;  %v1106_v4 = vld [vmem:[%s1479_s7 + $0x40] sm:$0xff]  ;;  %v1107_v8 = vld [vmem:[%s1479_s7 + $0x48] sm:$0xff]  ;;  %v1108_v12 = vld [vmem:[%s1479_s7 + $0x50] sm:$0xff]  ;;  %p1298_p13 = pnand %p1297_p12, %p1454_p4 }
  0x1c   : > { %1216 = vmatpush.bf16.msra.mxu2 %v1114_v1  ;;  %1217 = vmatpush.bf16.msra.mxu3 %v1114_v1  ;;  %v1110_v5 = vld [vmem:[%s1479_s7 + $0x60] sm:$0xff]  ;;  %v1111_v9 = vld [vmem:[%s1479_s7 + $0x68] sm:$0xff]  ;;  %v1112_v13 = vld [vmem:[%s1479_s7 + $0x70] sm:$0xff]  ;;  %p1303_p3 = por %p1302_p2, %p1301_p1 }
  0x1d   : > { %v1101_v14 = vld [vmem:[%s1479_s7 + $0x18] sm:$0xff]  ;;  %p1299_p0 = pneg %p1298_p13 }
  0x1e   : > { %1075 = vmatmul.msk.bf16.vlgmr.msra.gmra.mxu0 %vm425_vm0, %v1098_v2  ;;  %1079 = vmatmul.msk.bf16.vlgmr.msra.gmra.mxu1 %vm425_vm0, %v1102_v3  ;;  %v1105_v15 = vld [vmem:[%s1479_s7 + $0x38] sm:$0xff] }
  0x1f   : > { %1083 = vmatmul.msk.bf16.vlgmr.msra.gmra.mxu2 %vm425_vm0, %v1106_v4  ;;  %1087 = vmatmul.msk.bf16.vlgmr.msra.gmra.mxu3 %vm425_vm0, %v1110_v5  ;;  %v1109_v16 = vld [vmem:[%s1479_s7 + $0x58] sm:$0xff]  ;;  %p1304_p5 = pnand %p1303_p3, %p1299_p0 }
  0x20   : > { %v1113_v17 = vld [vmem:[%s1479_s7 + $0x78] sm:$0xff] }
  0x2e   : > { %1076 = vmatmul.msk.bf16.gmra.mxu0 %vm425_vm0, %v1099_v6  ;;  %1080 = vmatmul.msk.bf16.gmra.mxu1 %vm425_vm0, %v1103_v7 }
  0x2f   : > { %1084 = vmatmul.msk.bf16.gmra.mxu2 %vm425_vm0, %v1107_v8  ;;  %1088 = vmatmul.msk.bf16.gmra.mxu3 %vm425_vm0, %v1111_v9 }
  0x3e   : > { %1077 = vmatmul.msk.bf16.gmra.mxu0 %vm425_vm0, %v1100_v10  ;;  %1081 = vmatmul.msk.bf16.gmra.mxu1 %vm425_vm0, %v1104_v11 }
  0x3f   : > { %1085 = vmatmul.msk.bf16.gmra.mxu2 %vm425_vm0, %v1108_v12  ;;  %1089 = vmatmul.msk.bf16.gmra.mxu3 %vm425_vm0, %v1112_v13 }
  0x4e   : > { %1078 = vmatmul.msk.bf16.gmra.mxu0 %vm425_vm0, %v1101_v14  ;;  %1082 = vmatmul.msk.bf16.gmra.mxu1 %vm425_vm0, %v1105_v15 }
  0x4f   : > { %1086 = vmatmul.msk.bf16.gmra.mxu2 %vm425_vm0, %v1109_v16  ;;  %1090 = vmatmul.msk.bf16.gmra.mxu3 %vm425_vm0, %v1113_v17 }
  0x9b   : > { %v483_v18 = vpop.f32.mrf.mxu0  ;;  %v1513_v19 = vpop.f32.mrf.mxu1 }
  0x9c   : > { %v763_v51 = vmul.f32 %v483_v18, %v483_v18 }
  0xa2   : > { %v1519_v20 = vpop.f32.mrf.mxu2  ;;  %v1525_v25 = vpop.f32.mrf.mxu3 }
  0xa3   : > { %v485_v21 = vpop.f32.mrf.mxu0  ;;  %v1521_v22 = vpop.f32.mrf.mxu1 }
  0xa4   : > { %v1120_v23 = vpack.c.bf16 %v485_v21, %v483_v18  ;;  %v1140_v24 = vpack.c.bf16 %v1521_v22, %v1513_v19  ;;  %v764_v50 = vmul.f32 %v485_v21, %v485_v21  ;;  %v726_v53 = vadd.f32 %v485_v21, %v483_v18 }
  0xa5   : > { %v771_v21 = vmul.f32 %v1513_v19, %v1513_v19 }
  0xa6   : > { %1121 = vst [vmem:[%s1527_s10] sm:$0xff] %v1120_v23   ;;  %v795_v54 = vadd.f32 %v764_v50, %v763_v51 }
  0xa7   : > { %1200 = vst [vmem:[%s1527_s10 + $0x20] sm:$0xff] %v1140_v24  }
  0xaa   : > { %v1531_v26 = vpop.f32.mrf.mxu2  ;;  %v1537_v30 = vpop.f32.mrf.mxu3 }
  0xab   : > { %v488_v27 = vpop.f32.mrf.mxu0  ;;  %v1533_v28 = vpop.f32.mrf.mxu1  ;;  %v1160_v29 = vpack.c.bf16 %v1531_v26, %v1519_v20  ;;  %v1180_v31 = vpack.c.bf16 %v1537_v30, %v1525_v25 }
  0xac   : > { %v765_v52 = vmul.f32 %v488_v27, %v488_v27  ;;  %v727_v56 = vadd.f32 %v726_v53, %v488_v27 }
  0xad   : > { %1204 = vst [vmem:[%s1527_s10 + $0x40] sm:$0xff] %v1160_v29  }
  0xae   : > { %1208 = vst [vmem:[%s1527_s10 + $0x60] sm:$0xff] %v1180_v31   ;;  %v796_v58 = vadd.f32 %v795_v54, %v765_v52 }
  0xb2   : > { %v1543_v32 = vpop.f32.mrf.mxu2  ;;  %v1549_v37 = vpop.f32.mrf.mxu3 }
  0xb3   : > { %v490_v33 = vpop.f32.mrf.mxu0  ;;  %v1545_v34 = vpop.f32.mrf.mxu1 }
  0xb4   : > { %v1125_v35 = vpack.c.bf16 %v490_v33, %v488_v27  ;;  %v1145_v36 = vpack.c.bf16 %v1545_v34, %v1533_v28  ;;  %v766_v55 = vmul.f32 %v490_v33, %v490_v33  ;;  %v728_v63 = vadd.f32 %v727_v56, %v490_v33 }
  0xb5   : > { %v772_v27 = vmul.f32 %v1521_v22, %v1521_v22  ;;  %v773_v33 = vmul.f32 %v1533_v28, %v1533_v28 }
  0xb6   : > { %1197 = vst [vmem:[%s1527_s10 + $0x8] sm:$0xff] %v1125_v35   ;;  %v797_v1 = vadd.f32 %v796_v58, %v766_v55 }
  0xb7   : > { %1201 = vst [vmem:[%s1527_s10 + $0x28] sm:$0xff] %v1145_v36  }
  0xba   : > { %v1553_v38 = vpop.f32.mrf.mxu2  ;;  %v1559_v42 = vpop.f32.mrf.mxu3 }
  0xbb   : > { %v493_v39 = vpop.f32.mrf.mxu0  ;;  %v1555_v40 = vpop.f32.mrf.mxu1  ;;  %v1165_v41 = vpack.c.bf16 %v1553_v38, %v1543_v32  ;;  %v1185_v43 = vpack.c.bf16 %v1559_v42, %v1549_v37 }
  0xbc   : > { %v767_v59 = vmul.f32 %v493_v39, %v493_v39  ;;  %v729_v4 = vadd.f32 %v728_v63, %v493_v39 }
  0xbd   : > { %1205 = vst [vmem:[%s1527_s10 + $0x48] sm:$0xff] %v1165_v41   ;;  %v774_v41 = vmul.f32 %v1545_v34, %v1545_v34 }
  0xbe   : > { %1209 = vst [vmem:[%s1527_s10 + $0x68] sm:$0xff] %v1185_v43   ;;  %v798_v5 = vadd.f32 %v797_v1, %v767_v59 }
  0xc2   : > { %v1565_v44 = vpop.f32.mrf.mxu2  ;;  %v1571_v49 = vpop.f32.mrf.mxu3 }
  0xc3   : > { %v495_v45 = vpop.f32.mrf.mxu0  ;;  %v1567_v46 = vpop.f32.mrf.mxu1 }
  0xc4   : > { %v1130_v47 = vpack.c.bf16 %v495_v45, %v493_v39  ;;  %v1150_v48 = vpack.c.bf16 %v1567_v46, %v1555_v40  ;;  %v768_v2 = vmul.f32 %v495_v45, %v495_v45  ;;  %v730_v7 = vadd.f32 %v729_v4, %v495_v45 }
  0xc6   : > { %1198 = vst [vmem:[%s1527_s10 + $0x10] sm:$0xff] %v1130_v47   ;;  %v799_v8 = vadd.f32 %v798_v5, %v768_v2  ;;  %v775_v47 = vmul.f32 %v1555_v40, %v1555_v40 }
  0xc7   : > { %1202 = vst [vmem:[%s1527_s10 + $0x30] sm:$0xff] %v1150_v48  }
  0xca   : > { %v1575_v57 = vpop.f32.mrf.mxu2  ;;  %v1581_v0 = vpop.f32.mrf.mxu3 }
  0xcb   : > { %v498_v60 = vpop.f32.mrf.mxu0  ;;  %v1577_v61 = vpop.f32.mrf.mxu1  ;;  %v1170_v62 = vpack.c.bf16 %v1575_v57, %v1565_v44  ;;  %v1190_v3 = vpack.c.bf16 %v1581_v0, %v1571_v49 }
  0xcc   : > { %v769_v6 = vmul.f32 %v498_v60, %v498_v60  ;;  %v731_v9 = vadd.f32 %v730_v7, %v498_v60 }
  0xcd   : > { %1206 = vst [vmem:[%s1527_s10 + $0x50] sm:$0xff] %v1170_v62  }
  0xce   : > { %1210 = vst [vmem:[%s1527_s10 + $0x70] sm:$0xff] %v1190_v3   ;;  %v800_v11 = vadd.f32 %v799_v8, %v769_v6 }
  0xd2   : > { %v1587_v10 = vpop.f32.mrf.mxu2  ;;  %v1590_v18 = vpop.f32.mrf.mxu3 }
  0xd3   : > { %v500_v12 = vpop.f32.mrf.mxu0  ;;  %v520_v13 = vpop.f32.mrf.mxu1 }
  0xd4   : > { %v1135_v14 = vpack.c.bf16 %v500_v12, %v498_v60  ;;  %v732_v15 = vadd.f32 %v731_v9, %v500_v12  ;;  %v770_v16 = vmul.f32 %v500_v12, %v500_v12  ;;  %v1155_v17 = vpack.c.bf16 %v520_v13, %v1577_v61 }
  0xd6   : > { %1199 = vst [vmem:[%s1527_s10 + $0x18] sm:$0xff] %v1135_v14   ;;  %v733_v23 = vadd.f32 %v732_v15, %v1513_v19  ;;  %v801_v24 = vadd.f32 %v800_v11, %v770_v16 }
  0xd7   : > { %1203 = vst [vmem:[%s1527_s10 + $0x38] sm:$0xff] %v1155_v17  }
  0xd8   : > { %v734_v29 = vadd.f32 %v733_v23, %v1521_v22  ;;  %v802_v31 = vadd.f32 %v801_v24, %v771_v21 }
  0xda   : > { %v735_v35 = vadd.f32 %v734_v29, %v1533_v28  ;;  %v803_v19 = vadd.f32 %v802_v31, %v772_v27  ;;  %v540_v36 = vpop.f32.mrf.mxu2  ;;  %v1612_v45 = vpop.f32.mrf.mxu3 }
  0xdb   : > { %v1175_v39 = vpack.c.bf16 %v540_v36, %v1587_v10  ;;  %v1195_v28 = vpack.c.bf16 %v1612_v45, %v1590_v18 }
  0xdc   : > { %v804_v43 = vadd.f32 %v803_v19, %v773_v33  ;;  %v736_v22 = vadd.f32 %v735_v35, %v1545_v34  ;;  %v776_v34 = vmul.f32 %v1567_v46, %v1567_v46 }
  0xdd   : > { %1207 = vst [vmem:[%s1527_s10 + $0x58] sm:$0xff] %v1175_v39  }
  0xde   : > { %v737_v48 = vadd.f32 %v736_v22, %v1555_v40  ;;  %v805_v50 = vadd.f32 %v804_v43, %v774_v41  ;;  %1211 = vst [vmem:[%s1527_s10 + $0x78] sm:$0xff] %v1195_v28  }
  0xe0   : > { %v738_v51 = vadd.f32 %v737_v48, %v1567_v46  ;;  %v806_v52 = vadd.f32 %v805_v50, %v775_v47 }
  0xe1   : > { %1307 = shalt.err (!%p1304_p5)
}
  0xe2   : > { %s1392_s9 = smov 64   ;;  %s1393_s10 = smov 4   ;;  %v739_v40 = vadd.f32 %v738_v51, %v1577_v61  ;;  %v777_v46 = vmul.f32 %v1577_v61, %v1577_v61  ;;  %v807_v53 = vadd.f32 %v806_v52, %v776_v34  ;;  %v778_v56 = vmul.f32 %v520_v13, %v520_v13 }
  0xe3   : > { %1218 = dma.vmem_to_hbm [thread:$0]  (%p1454_p4), %s1614_s23, 2048, %s858_s26, %s838_s27, %s1392_s9, %s1392_s9, %s1393_s10   ;;  %v779_v58 = vmul.f32 %v1519_v20, %v1519_v20  ;;  %v780_v62 = vmul.f32 %v1531_v26, %v1531_v26  ;;  %v781_v2 = vmul.f32 %v1543_v32, %v1543_v32  ;;  %v782_v4 = vmul.f32 %v1553_v38, %v1553_v38 }
  0xe4   : > { %v808_v54 = vadd.f32 %v807_v53, %v777_v46  ;;  %v740_v55 = vadd.f32 %v739_v40, %v520_v13  ;;  %v784_v9 = vmul.f32 %v1575_v57, %v1575_v57  ;;  %v785_v13 = vmul.f32 %v1587_v10, %v1587_v10  ;;  %s1000_s11 = sshll.u32 %s1516_s8, 3  ;;  %s1095_s18 = sshll.u32 %s1382_s15, 3 }
  0xe5   : > { %v786_v15 = vmul.f32 %v540_v36, %v540_v36  ;;  %v787_v16 = vmul.f32 %v1525_v25, %v1525_v25  ;;  %v788_v21 = vmul.f32 %v1537_v30, %v1537_v30  ;;  %v789_v24 = vmul.f32 %v1549_v37, %v1549_v37  ;;  %s870_s23 = scalar_lea.hbm %s1727_s3, %s1095_s18  ;;  %s211_s26 = scalar_lea.vmem [#allocation5], %s1000_s11 }
  0xe6   : > { %v741_v59 = vadd.f32 %v740_v55, %v1519_v20  ;;  %v809_v60 = vadd.f32 %v808_v54, %v778_v56  ;;  %v783_v20 = vmul.f32 %v1565_v44, %v1565_v44  ;;  %v790_v29 = vmul.f32 %v1559_v42, %v1559_v42  ;;  %s872_s27 = sshll.u32 %s211_s26, 4  ;;  %s874_s28 = sshll.u32 %s870_s23, 4  ;;  %s873_s27 = int_to_ptr.vmem [resolvable:$true] %s872_s27  ;;  %s875_s28 = int_to_ptr.hbm [resolvable:$true] %s874_s28 }
  0xe7   : > { %vm832_vm1 = vcmask 1040384   ;;  %vm834_vm2 = vcmask 1041408   ;;  %s843_s15 = scalar_lea.sflag [#allocation6], %s1516_s8  ;;  %s1322_s29 = sshra.s32 %s875_s28, 4  ;;  %s1323_s29 = int_to_ptr.hbm [resolvable:$true] %s1322_s29 }
  0xe8   : > { %v742_v63 = vadd.f32 %v741_v59, %v1531_v26  ;;  %v810_v1 = vadd.f32 %v809_v60, %v779_v58  ;;  %s1324_s30 = scalar_lea.hbm %s1323_s29, 8  ;;  %s1328_s6 = scalar_lea.hbm %s1727_s3, 64 }
  0xe9   : > { %p1325_p6 = scmp.ne.s32.totalorder %s1323_s29, %s1324_s30  ;;  %p1329_p10 = scmp.lt.s32.totalorder %s1323_s29, %s1727_s3 }
  0xea   : > { %v743_v61 = vadd.f32 %v742_v63, %v1543_v32  ;;  %v811_v3 = vadd.f32 %v810_v1, %v780_v62  ;;  %p1330_p11 = scmp.lt.s32.totalorder %s1328_s6, %s1324_s30 }
  0xeb   : > { %p1326_p7 = pnand %p1325_p6, %p1454_p4 }
  0xec   : > { %v812_v5 = vadd.f32 %v811_v3, %v781_v2  ;;  %v744_v6 = vadd.f32 %v743_v61, %v1553_v38  ;;  %p1331_p12 = por %p1330_p11, %p1329_p10 }
  0xed   : > { %p1327_p9 = pneg %p1326_p7 }
  0xee   : > { %v745_v7 = vadd.f32 %v744_v6, %v1565_v44  ;;  %v813_v8 = vadd.f32 %v812_v5, %v782_v4 }
  0xef   : > { %p1332_p13 = pnand %p1331_p12, %p1327_p9 }
  0xf0   : > { %v746_v26 = vadd.f32 %v745_v7, %v1575_v57  ;;  %v814_v11 = vadd.f32 %v813_v8, %v783_v20 }
  0xf2   : > { %v815_v32 = vadd.f32 %v814_v11, %v784_v9  ;;  %v747_v12 = vadd.f32 %v746_v26, %v1587_v10 }
  0xf4   : > { %v816_v14 = vadd.f32 %v815_v32, %v785_v13  ;;  %v748_v38 = vadd.f32 %v747_v12, %v540_v36 }
  0xf6   : > { %v749_v44 = vadd.f32 %v748_v38, %v1525_v25  ;;  %v817_v17 = vadd.f32 %v816_v14, %v786_v15  ;;  %v791_v25 = vmul.f32 %v1571_v49, %v1571_v49 }
  0xf8   : > { %v750_v57 = vadd.f32 %v749_v44, %v1537_v30  ;;  %v818_v23 = vadd.f32 %v817_v17, %v787_v16 }
  0xfa   : > { %v751_v10 = vadd.f32 %v750_v57, %v1549_v37  ;;  %v819_v27 = vadd.f32 %v818_v23, %v788_v21  ;;  %v792_v37 = vmul.f32 %v1581_v0, %v1581_v0 }
  0xfc   : > { %v820_v31 = vadd.f32 %v819_v27, %v789_v24  ;;  %v752_v33 = vadd.f32 %v751_v10, %v1559_v42  ;;  %v793_v42 = vmul.f32 %v1590_v18, %v1590_v18 }
  0xfe   : > { %v753_v35 = vadd.f32 %v752_v33, %v1571_v49  ;;  %v821_v19 = vadd.f32 %v820_v31, %v790_v29  ;;  %v794_v49 = vmul.f32 %v1612_v45, %v1612_v45 }
 0x100   : > { %v754_v30 = vadd.f32 %v753_v35, %v1581_v0  ;;  %v822_v36 = vadd.f32 %v821_v19, %v791_v25 }
 0x102   : > { %v823_v39 = vadd.f32 %v822_v36, %v792_v37  ;;  %v755_v41 = vadd.f32 %v754_v30, %v1590_v18 }
 0x104   : > { %v824_v43 = vadd.f32 %v823_v39, %v793_v42  ;;  %v756_v22 = vadd.f32 %v755_v41, %v1612_v45 }
 0x106   : > { %v757_v28 = vrot.slane %v756_v22, 4  ;;  %v825_v47 = vadd.f32 %v824_v43, %v794_v49 }
 0x108   : > { %v758_v48 = vadd.f32 %v757_v28, %v756_v22  ;;  %v826_v50 = vrot.slane %v825_v47, 4 }
 0x10a   : > { %v759_v34 = vrot.slane %v758_v48, 2  ;;  %v827_v51 = vadd.f32 %v826_v50, %v825_v47 }
 0x10c   : > { %v760_v0 = vadd.f32 %v759_v34, %v758_v48  ;;  %v828_v52 = vrot.slane %v827_v51, 2 }
 0x10e   : > { %v761_v40 = vrot.slane %v760_v0, 1  ;;  %v829_v46 = vadd.f32 %v828_v52, %v827_v51 }
 0x110   : > { %v830_v18 = vrot.slane %v829_v46, 1  ;;  %v762_v45 = vadd.f32 %v761_v40, %v760_v0 }
 0x112   : > { %v831_v53 = vadd.f32 %v830_v18, %v829_v46 }
 0x114   : > { %v833_v54 = vsel %vm832_vm1, %v762_v45, %v831_v53 }
 0x115   : > { %v835_v55 = vsel %vm834_vm2, %v833_v54, 0.0 }
 0x116   : > { %836 = vst [vmem:[%s211_s26] sm:$0xff] %v835_v55 }
 0x117   : > { %1335 = shalt.err (!%p1332_p13)
}
 0x118   : > { %1219 = dma.vmem_to_hbm [thread:$0]  (%p1454_p4), %s873_s27, 128, %s875_s28, %s843_s15  }
 0x119 PF: > { %p1229_p0 = scmp.ge.s32.totalorder %s1390_s17, 2  ;;  %s886_s8 = sand.u32 1, %s1370_s12  }
 0x11a   : > { %s887_s10 = scalar_lea.sflag [#allocation4], %s886_s8 }
 0x11b   : > { %p1223_p1 = pnand %p1229_p0, %p1461_p8 }
 0x11d   : > { %p1224_p2 = pneg %p1223_p1 }
 0x11f   : > { %1361 = dma.done.wait (%p1224_p2), %s887_s10, 2048  }
 0x120   : > { %1363 = vsyncadd (%p1224_p2), %s887_s10, 4294965248  ;;  %s897_s11 = scalar_lea.sflag [#allocation6], %s886_s8 }
 0x121   : > { %1365 = dma.done.wait (%p1224_p2), %s897_s11, 128  }
 0x122   : > { %1367 = vsyncadd (%p1224_p2), %s897_s11, 4294967168  ;;  %s20_s17 = sadd.s32 1, %s1390_s17   ;;  %s1730_s12 = smov %s1374_s13 }
 0x123   : > { %p17_p3 = scmp.ge.s32.totalorder %s20_s17, 10   ;;  %s1731_s13 = smov %s1378_s14 }
 0x124   : > { %s1732_s14 = smov %s1467_s25  ;;  %s1733_s15 = smov %s1386_s16 }
 0x125   : > { %s1734_s16 = smov %s1736_s20  ;;  %19 = sbr.rel (!%p17_p3) target bundleno = 6 (0x6), region = 91 }
 0x12a   :  { %903 = vsyncpa [#allocation4], 1 }
 0x12b   :  { %905 = vsyncpa [#allocation4 + $0x1], 1 }
 0x12c   :  { %906 = vsyncpa [#allocation6], 1 }
 0x12d   :  { %908 = vsyncpa [#allocation6 + $0x1], 1 }

</bundles_post_ra>
